<compile_context>
chip_gen: v7x
topology: tpu7x:2x2x1
jax: 0.10.0
libtpu: 0.0.40
codegen_flags: <defaults>
</compile_context>

<pallas_src>
import jax
import jax.numpy as jnp
from jax.experimental import pallas as pl
from jax.experimental.pallas import tpu as pltpu

MEAN = 0.0
STD = 1.0
SELECT_PROB = 0.5

_LANE = 512            # lane-dense last dim (multiple of 128)
_MAX_BLOCK_ROWS = 256  # 256 x 512 f32 = 512 KiB per array per block


def explorer_kernel(x_ref, g_ref, u_ref, o_ref):
    """out = where(u < SELECT_PROB, x + MEAN + STD * g, x)."""
    x = x_ref[...].astype(jnp.float32)
    g = g_ref[...].astype(jnp.float32)
    u = u_ref[...]

    noisy = x + jnp.float32(MEAN) + jnp.float32(STD) * g      # GaussianNoiser
    out = jnp.where(u < jnp.float32(SELECT_PROB), noisy, x)   # RandSelector
    o_ref[...] = out.astype(o_ref.dtype)


def explorer_forward(x_nchw: jax.Array, key: jax.Array) -> jax.Array:
    orig_shape = x_nchw.shape
    dtype = x_nchw.dtype
    total = int(x_nchw.size)

    # Lane-dense tiling: (rows_padded, _LANE), tiled over rows.
    lane = _LANE
    rows = -(-total // lane)                       # ceil div
    if rows < _MAX_BLOCK_ROWS:
        block_rows = rows                          # single full-extent block
        rows_padded = rows
    else:
        block_rows = _MAX_BLOCK_ROWS               # multiple of 8
        rows_padded = -(-rows // block_rows) * block_rows
    padded_total = rows_padded * lane

    x_flat = x_nchw.reshape(-1)
    if padded_total != total:
        x_flat = jnp.pad(x_flat, (0, padded_total - total))
    x2d = x_flat.reshape(rows_padded, lane)

    # TODO(synk): on hardware, draw the randoms inside the kernel with
    # pltpu.prng_seed / pltpu.prng_random_bits (seed perturbed per grid step)
    # to cut HBM traffic from 3 input streams to 1; those primitives have no
    # CPU/interpret lowering, so the RNG is staged host-side here.
    kg, ku = jax.random.split(key)
    gauss = jax.random.normal(kg, (rows_padded, lane), dtype=jnp.float32)
    unif = jax.random.uniform(ku, (rows_padded, lane), dtype=jnp.float32)

    grid = (rows_padded // block_rows,)
    spec = pl.BlockSpec((block_rows, lane), lambda i: (i, 0))

    out2d = pl.pallas_call(
        explorer_kernel,
        out_shape=jax.ShapeDtypeStruct((rows_padded, lane), dtype),
        grid=grid,
        in_specs=[spec, spec, spec],
        out_specs=spec,
        compiler_params=pltpu.CompilerParams(
            dimension_semantics=("parallel",),
        ),
    )(x2d, gauss, unif)

    out_flat = out2d.reshape(-1)
    if padded_total != total:
        out_flat = out_flat[:total]
    return out_flat.reshape(orig_shape)


if __name__ == "__main__":
    key = jax.random.PRNGKey(0)
    kx, knoise = jax.random.split(key)
    x = jax.random.normal(kx, (2, 4, 16, 16), dtype=jnp.float32)  # NCHW

    out = explorer_forward(x, knoise)
    out = jax.block_until_ready(out)

    assert out.shape == x.shape and out.dtype == x.dtype

    # Sanity: every output element is either x (not selected) or a noised
    # version of x (selected). With SELECT_PROB=0.5 some of each must appear.
    same = jnp.isclose(out, x)
    assert bool(jnp.any(same)) and bool(jnp.any(~same))

    print("KERNEL_OK")
</pallas_src>

<mosaic_0001>
module attributes {stable_mosaic.version = 11 : i64} {
  func.func @explorer_kernel(%arg0: i32, %arg1: memref<4x512xf32, #tpu.memory_space<vmem>>, %arg2: memref<4x512xf32, #tpu.memory_space<vmem>>, %arg3: memref<4x512xf32, #tpu.memory_space<vmem>>, %arg4: memref<4x512xf32, #tpu.memory_space<vmem>>) attributes {dimension_semantics = [#tpu.dimension_semantics<parallel>], iteration_bounds = array<i64: 1>, scalar_prefetch = 0 : i64, scratch_operands = 0 : i64, tpu.core_type = #tpu.core_type<tc>, window_params = [{transform_indices = @transform_0, window_bounds = array<i64: 4, 512>}, {transform_indices = @transform_1, window_bounds = array<i64: 4, 512>}, {transform_indices = @transform_2, window_bounds = array<i64: 4, 512>}, {transform_indices = @transform_3, window_bounds = array<i64: 4, 512>}]} {
    %c0 = arith.constant 0 : index
    %c0_0 = arith.constant 0 : index
    %0 = vector.load %arg1[%c0, %c0_0] : memref<4x512xf32, #tpu.memory_space<vmem>>, vector<4x512xf32>
    %c0_1 = arith.constant 0 : index
    %c0_2 = arith.constant 0 : index
    %1 = vector.load %arg2[%c0_1, %c0_2] : memref<4x512xf32, #tpu.memory_space<vmem>>, vector<4x512xf32>
    %c0_3 = arith.constant 0 : index
    %c0_4 = arith.constant 0 : index
    %2 = vector.load %arg3[%c0_3, %c0_4] : memref<4x512xf32, #tpu.memory_space<vmem>>, vector<4x512xf32>
    %cst = arith.constant 0.000000e+00 : f32
    %3 = vector.broadcast %cst : f32 to vector<4x512xf32>
    %4 = arith.addf %0, %3 : vector<4x512xf32>
    %cst_5 = arith.constant 1.000000e+00 : f32
    %5 = vector.broadcast %cst_5 : f32 to vector<4x512xf32>
    %6 = arith.mulf %5, %1 : vector<4x512xf32>
    %7 = arith.addf %4, %6 : vector<4x512xf32>
    %cst_6 = arith.constant 5.000000e-01 : f32
    %8 = vector.broadcast %cst_6 : f32 to vector<4x512xf32>
    %9 = arith.cmpf olt, %2, %8 : vector<4x512xf32>
    %10 = arith.select %9, %7, %0 : vector<4x512xi1>, vector<4x512xf32>
    %c0_7 = arith.constant 0 : index
    %c0_8 = arith.constant 0 : index
    %11 = vector.load %arg4[%c0_7, %c0_8] : memref<4x512xf32, #tpu.memory_space<vmem>>, vector<4x512xf32>
    tpu.vector_store %arg4[%c0_7, %c0_8], %10 {strides = array<i32>} : memref<4x512xf32, #tpu.memory_space<vmem>>, vector<4x512xf32>,
    return
  }
  func.func @transform_0(%arg0: i32) -> (i32, i32) {
    %c0_i32 = arith.constant 0 : i32
    %c0_i32_0 = arith.constant 0 : i32
    return %arg0, %c0_i32 : i32, i32
  }
  func.func @transform_1(%arg0: i32) -> (i32, i32) {
    %c0_i32 = arith.constant 0 : i32
    %c0_i32_0 = arith.constant 0 : i32
    return %arg0, %c0_i32 : i32, i32
  }
  func.func @transform_2(%arg0: i32) -> (i32, i32) {
    %c0_i32 = arith.constant 0 : i32
    %c0_i32_0 = arith.constant 0 : i32
    return %arg0, %c0_i32 : i32, i32
  }
  func.func @transform_3(%arg0: i32) -> (i32, i32) {
    %c0_i32 = arith.constant 0 : i32
    %c0_i32_0 = arith.constant 0 : i32
    return %arg0, %c0_i32 : i32, i32
  }
}

</mosaic_0001>

<bundles_post_ra>
// kernel: tpu_custom_call.1
= control target key start
LH: loop header
LB: loop body
LE: loop exit
PB: predicated region body
PF: predicated region fallthrough
CT: control target
= control target key end

     0   :  { %8 = vsyncpa [#allocation3], 0  ;;  %s252_s0 = inlined_call_operand.hbm [shape: f32[4,512], index: 0, kind: input, shape index: {}]   ;;  %s253_s1 = inlined_call_operand.hbm [shape: f32[4,512], index: 1, kind: input, shape index: {}]   ;;  %s254_s2 = inlined_call_operand.hbm [shape: f32[4,512], index: 2, kind: input, shape index: {}]   ;;  %s255_s3 = inlined_call_operand.hbm [shape: f32[4,512], index: 3, kind: output, shape index: {}]  }
   0x1   :  { %9 = vsyncpa [#allocation6], 0 }
   0x2   :  { %10 = vsyncpa [#allocation4], 0  ;;  %s180_s12 = smov [#allocation5]   ;;  %s181_s14 = smov [#allocation2]  }
   0x3   :  { %s27_s13 = sshll.u32 %s180_s12, 4  ;;  %s17_s15 = sshll.u32 %s181_s14, 4  ;;  %s28_s13 = int_to_ptr.vmem [resolvable:$true] %s27_s13  ;;  %s18_s15 = int_to_ptr.vmem [resolvable:$true] %s17_s15 }
   0x4   :  { %s86_s18 = scalar_lea.hbm %s253_s1, 256 }
   0x5   :  { %p87_p0 = scmp.ne.s32.totalorder %s253_s1, %s86_s18  ;;  %p90_p1 = scmp.lt.u32.totalorder %s86_s18, %s253_s1 }
   0x7   :  { %p92_p2 = pnand %p90_p1, %p87_p0 }
   0x9   :  { %95 = shalt.err (!%p92_p2)
}
   0xa   :  { %s96_s23 = scalar_lea.vmem %s28_s13, 256  ;;  %p101_p4 = scmp.lt.s32.totalorder %s28_s13, %s28_s13 }
   0xb   :  { %p97_p3 = scmp.ne.s32.totalorder %s28_s13, %s96_s23  ;;  %p102_p5 = scmp.lt.s32.totalorder %s96_s23, %s96_s23 }
   0xd   :  { %p103_p6 = por %p102_p5, %p101_p4 }
   0xf   :  { %p104_p7 = pnand %p103_p6, %p97_p3 }
  0x11   :  { %107 = shalt.err (!%p104_p7)
}
  0x12   :  { %30 = dma.hbm_to_vmem [thread:$0]  %s253_s1, 256, %s28_s13, [#allocation6]  }
  0x13   :  { %s108_s28 = scalar_lea.hbm %s252_s0, 256 }
  0x14   :  { %p109_p8 = scmp.ne.s32.totalorder %s252_s0, %s108_s28  ;;  %p112_p9 = scmp.lt.u32.totalorder %s108_s28, %s252_s0 }
  0x16   :  { %p114_p10 = pnand %p112_p9, %p109_p8 }
  0x18   :  { %117 = shalt.err (!%p114_p10)
}
  0x19   :  { %s118_s6 = scalar_lea.vmem %s18_s15, 256  ;;  %p123_p12 = scmp.lt.s32.totalorder %s18_s15, %s18_s15 }
  0x1a   :  { %p119_p11 = scmp.ne.s32.totalorder %s18_s15, %s118_s6  ;;  %p124_p13 = scmp.lt.s32.totalorder %s118_s6, %s118_s6 }
  0x1c   :  { %p125_p0 = por %p124_p13, %p123_p12 }
  0x1e   :  { %p126_p1 = pnand %p125_p0, %p119_p11 }
  0x20   :  { %129 = shalt.err (!%p126_p1)
}
  0x21   :  { %20 = dma.hbm_to_vmem [thread:$0]  %s252_s0, 256, %s18_s15, [#allocation3]  }
  0x22   :  { %s182_s8 = smov [#allocation7]   ;;  %s130_s12 = scalar_lea.hbm %s254_s2, 256 }
  0x23   :  { %s37_s9 = sshll.u32 %s182_s8, 4  ;;  %p131_p2 = scmp.ne.s32.totalorder %s254_s2, %s130_s12  ;;  %s38_s9 = int_to_ptr.vmem [resolvable:$true] %s37_s9 }
  0x24   :  { %p134_p3 = scmp.lt.u32.totalorder %s130_s12, %s254_s2 }
  0x26   :  { %p136_p4 = pnand %p134_p3, %p131_p2 }
  0x28   :  { %139 = shalt.err (!%p136_p4)
}
  0x29   :  { %s140_s18 = scalar_lea.vmem %s38_s9, 256  ;;  %p145_p6 = scmp.lt.s32.totalorder %s38_s9, %s38_s9 }
  0x2a   :  { %p141_p5 = scmp.ne.s32.totalorder %s38_s9, %s140_s18  ;;  %p146_p7 = scmp.lt.s32.totalorder %s140_s18, %s140_s18 }
  0x2c   :  { %p147_p8 = por %p146_p7, %p145_p6 }
  0x2e   :  { %p148_p9 = pnand %p147_p8, %p141_p5 }
  0x30   :  { %151 = shalt.err (!%p148_p9)
}
  0x31   :  { %40 = dma.hbm_to_vmem [thread:$0]  %s254_s2, 256, %s38_s9, [#allocation6]  }
  0x32   :  { %174 = dma.done.wait [#allocation3], 256  }
  0x33   :  { %175 = vsyncadd [#allocation3], 4294967040 }
  0x34   :  { %176 = dma.done.wait [#allocation6], 512  }
  0x35   :  { %177 = vsyncadd [#allocation6], 4294966784  ;;  %v50_v0 = vld [vmem:[#allocation2] sm:$0xff]  ;;  %v52_v1 = vld [vmem:[#allocation5] sm:$0xff]  ;;  %s183_s19 = smov [#allocation8]  }
  0x36   :  { %v54_v2 = vld [vmem:[#allocation7] sm:$0xff]  ;;  %s72_s20 = sshll.u32 %s183_s19, 4  ;;  %v58_v3 = vadd.f32 %v52_v1, %v50_v0  ;;  %v51_v4 = vld [vmem:[#allocation2 + $0x8] sm:$0xff]  ;;  %v53_v5 = vld [vmem:[#allocation5 + $0x8] sm:$0xff]  ;;  %s73_s20 = int_to_ptr.vmem [resolvable:$true] %s72_s20 }
  0x37   :  { %vm60_vm0 = vcmp.lt.f32.partialorder %v54_v2, 0.5  ;;  %v55_v6 = vld [vmem:[#allocation7 + $0x8] sm:$0xff]  ;;  %v59_v7 = vadd.f32 %v53_v5, %v51_v4  ;;  %s152_s2 = scalar_lea.vmem %s73_s20, 256  ;;  %p157_p11 = scmp.lt.s32.totalorder %s73_s20, %s73_s20 }
  0x38   :  { %vm61_vm1 = vcmp.lt.f32.partialorder %v55_v6, 0.5  ;;  %v62_v8 = vsel %vm60_vm0, %v58_v3, %v50_v0  ;;  %p153_p10 = scmp.ne.s32.totalorder %s73_s20, %s152_s2  ;;  %p158_p12 = scmp.lt.s32.totalorder %s152_s2, %s152_s2 }
  0x39   :  { %64 = vst [vmem:[#allocation8] sm:$0xff] %v62_v8  ;;  %v63_v9 = vsel %vm61_vm1, %v59_v7, %v51_v4 }
  0x3a   :  { %65 = vst [vmem:[#allocation8 + $0x8] sm:$0xff] %v63_v9  ;;  %p159_p13 = por %p158_p12, %p157_p11 }
  0x3c   :  { %p160_p0 = pnand %p159_p13, %p153_p10 }
  0x3e   :  { %163 = shalt.err (!%p160_p0)
}
  0x3f   :  { %s164_s23 = scalar_lea.hbm %s255_s3, 256 }
  0x40   :  { %p165_p1 = scmp.ne.s32.totalorder %s255_s3, %s164_s23  ;;  %p168_p2 = scmp.lt.u32.totalorder %s164_s23, %s255_s3 }
  0x42   :  { %p170_p3 = pnand %p168_p2, %p165_p1 }
  0x44   :  { %173 = shalt.err (!%p170_p3)
}
  0x45   :  { %75 = dma.vmem_to_hbm [thread:$0]  %s73_s20, 256, %s255_s3, [#allocation4]  }
  0x46   :  { %178 = dma.done.wait [#allocation4], 256  }
  0x47   :  { %179 = vsyncadd [#allocation4], 4294967040 }
  0x48   :  { %79 = vsyncpa [#allocation3], 1 }
  0x49   :  { %80 = vsyncpa [#allocation6], 1 }
  0x4a   :  { %81 = vsyncpa [#allocation4], 1 }

</bundles_post_ra>
